<compile_context>
chip_gen: v7x
topology: tpu7x:2x2x1
jax: 0.10.0
libtpu: 0.0.40
codegen_flags: <defaults>
</compile_context>

<pallas_src>
import functools
import math

import jax
import jax.numpy as jnp
from jax.experimental import pallas as pl
from jax.experimental.pallas import tpu as pltpu


def _round_up(x: int, m: int) -> int:
    return ((x + m - 1) // m) * m


def _gelu(y):
    return 0.5 * y * (1.0 + jnp.tanh(y * 0.7978845608 * (1.0 + 0.044715 * y * y)))


# --------------------------------------------------------------------------------------
# Kernels
# --------------------------------------------------------------------------------------
def _linear_wn_kernel_f32out(x_ref, w_ref, s_ref, b_ref, o_ref, *, activations: bool):
    """f32 output: accumulate straight into the VMEM-resident output block."""
    k = pl.program_id(2)

    @pl.when(k == 0)
    def _():
        o_ref[...] = jnp.zeros_like(o_ref)

    o_ref[...] += jnp.dot(x_ref[...], w_ref[...], preferred_element_type=jnp.float32)

    @pl.when(k == pl.num_programs(2) - 1)
    def _():
        # Post-matmul weight-norm column scale + bias (both lane-dense (1, tn)).
        y = o_ref[...] * s_ref[...] + b_ref[...]
        if activations:
            y = _gelu(y)  # tanh goes to the EUP slot -> effectively free per tile.
        o_ref[...] = y.astype(o_ref.dtype)


def _linear_wn_kernel_scratch(x_ref, w_ref, s_ref, b_ref, o_ref, acc_ref, *,
                              activations: bool):
    """Non-f32 output: f32 VMEM scratch accumulator, cast in the epilogue."""
    k = pl.program_id(2)

    @pl.when(k == 0)
    def _():
        acc_ref[...] = jnp.zeros_like(acc_ref)

    acc_ref[...] += jnp.dot(x_ref[...], w_ref[...], preferred_element_type=jnp.float32)

    @pl.when(k == pl.num_programs(2) - 1)
    def _():
        y = acc_ref[...] * s_ref[...] + b_ref[...]
        if activations:
            y = _gelu(y)
        o_ref[...] = y.astype(o_ref.dtype)


# --------------------------------------------------------------------------------------
# Wrapper
# --------------------------------------------------------------------------------------
def prepare_weightnorm_params(v, g, b, *, operand_dtype):
    """One-time parameter prep (cache / jit this when v, g, b are static):
       wt: (K, N) operand-dtype weight, s: (1, N) f32 g/||v|| scale, b2: (1, N) f32."""
    N, K = v.shape
    v32 = v.astype(jnp.float32)
    norm = jnp.sqrt(jnp.sum(v32 * v32, axis=1, keepdims=True))           # (N, 1)
    norm = jnp.maximum(norm, jnp.finfo(jnp.float32).tiny)                # zero-row guard
    s = (g.astype(jnp.float32).reshape(N, 1) / norm).reshape(1, N)       # (1, N)
    b2 = b.astype(jnp.float32).reshape(1, N)                             # (1, N)
    wt = v.astype(operand_dtype).T                                       # (K, N) MXU layout
    return wt, s, b2


def linear_weightnorm_prepared(x, wt, s, b2, *, activations: bool,
                               tm=512, tn=1024, tk=1024, out_dtype=None):
    """x: (M, K) in operand dtype; wt: (K, N); s, b2: (1, N) f32 -> (M, N)."""
    M, K = x.shape
    Kw, N = wt.shape
    assert K == Kw
    out_dtype = out_dtype if out_dtype is not None else x.dtype

    # Tile clamp: keep sublane packing of the I/O dtype on tm, 256-lane multiples
    # on tn/tk (fills the 2x256x256 MXU on v6e/v7x; a multiple of 128 on v5e).
    sub = max(8, 32 // jnp.dtype(out_dtype).itemsize)
    tm = min(tm, _round_up(M, sub))
    tn = min(tn, _round_up(N, 256))
    tk = min(tk, _round_up(K, 256))
    Mp, Np, Kp = _round_up(M, tm), _round_up(N, tn), _round_up(K, tk)

    # Pad only when needed (padding is an extra HBM pass; skip it on aligned shapes).
    xp = jnp.pad(x, ((0, Mp - M), (0, Kp - K))) if (Mp != M or Kp != K) else x
    wp = jnp.pad(wt, ((0, Kp - K), (0, Np - N))) if (Kp != K or Np != N) else wt
    sp = jnp.pad(s, ((0, 0), (0, Np - N))) if Np != N else s
    bp = jnp.pad(b2, ((0, 0), (0, Np - N))) if Np != N else b2

    grid = (Mp // tm, Np // tn, Kp // tk)
    needs_acc = jnp.dtype(out_dtype) != jnp.dtype(jnp.float32)

    # VMEM budget from the actual tile footprint (double-buffered in/out + scratch),
    # floored at 32 MiB, capped at 64 MiB so it is safe on v7x's physical VMEM.
    in_b = jnp.dtype(x.dtype).itemsize
    out_b = jnp.dtype(out_dtype).itemsize
    vmem_bytes = 2 * (tm * tk * in_b + tk * tn * in_b + tm * tn * out_b + 2 * tn * 4 * 2)
    if needs_acc:
        vmem_bytes += tm * tn * 4
    vmem_limit = int(min(max(vmem_bytes * 5 // 4 + (4 << 20), 32 << 20), 64 << 20))

    in_specs = [
        pl.BlockSpec((tm, tk), lambda i, j, k: (i, k)),   # x tile
        pl.BlockSpec((tk, tn), lambda i, j, k: (k, j)),   # w tile (pre-transposed)
        pl.BlockSpec((1, tn), lambda i, j, k: (0, j)),    # weight-norm scale
        pl.BlockSpec((1, tn), lambda i, j, k: (0, j)),    # bias
    ]
    out_spec = pl.BlockSpec((tm, tn), lambda i, j, k: (i, j))

    if needs_acc:
        kernel = functools.partial(_linear_wn_kernel_scratch, activations=activations)
        scratch = [pltpu.VMEM((tm, tn), jnp.float32)]
    else:
        kernel = functools.partial(_linear_wn_kernel_f32out, activations=activations)
        scratch = []

    out = pl.pallas_call(
        kernel,
        out_shape=jax.ShapeDtypeStruct((Mp, Np), out_dtype),
        grid_spec=pltpu.PrefetchScalarGridSpec(
            num_scalar_prefetch=0,
            grid=grid,
            in_specs=in_specs,
            out_specs=out_spec,
            scratch_shapes=scratch,
        ),
        compiler_params=pltpu.CompilerParams(
            dimension_semantics=("parallel", "parallel", "arbitrary"),
            vmem_limit_bytes=vmem_limit,
        ),
    )(xp, wp, sp, bp)

    return out[:M, :N]


def linear_weightnorm(x, v, g, b, *, activations: bool,
                      tm=512, tn=1024, tk=1024, mxu_dtype=None):
    """x: (M, K); v: (N, K) [PyTorch layout]; g: (N,) or (N, 1); b: (N,) -> (M, N).
    mxu_dtype: optionally run the contraction in bf16 (f32 accumulation/epilogue kept)."""
    operand_dtype = jnp.dtype(mxu_dtype) if mxu_dtype is not None else jnp.dtype(x.dtype)
    wt, s, b2 = prepare_weightnorm_params(v, g, b, operand_dtype=operand_dtype)
    return linear_weightnorm_prepared(x.astype(operand_dtype), wt, s, b2,
                                      activations=activations,
                                      tm=tm, tn=tn, tk=tk, out_dtype=x.dtype)


# --------------------------------------------------------------------------------------
# Reference + init (matches the module's __init__ / forward)
# --------------------------------------------------------------------------------------
def init_params(key, in_features: int, out_features: int, activations: bool):
    std = math.sqrt((2.0 if activations else 1.0) / in_features)
    v = std * jax.random.normal(key, (out_features, in_features), dtype=jnp.float32)
    # weight_norm init: g = ||v||_row, so the effective weight equals v at init.
    g = jnp.sqrt(jnp.sum(v * v, axis=1, keepdims=True))       # (N, 1)
    b = jnp.zeros((out_features,), dtype=jnp.float32)
    return v, g, b


def _reference(x, v, g, b, activations: bool):
    x32, v32 = x.astype(jnp.float32), v.astype(jnp.float32)
    norm = jnp.maximum(jnp.sqrt(jnp.sum(v32 * v32, axis=1, keepdims=True)),
                       jnp.finfo(jnp.float32).tiny)
    w = v32 * (g.astype(jnp.float32).reshape(-1, 1) / norm)
    y = x32 @ w.T + b.astype(jnp.float32).reshape(1, -1)
    if activations:
        y = _gelu(y)
    return y


if __name__ == "__main__":
    key = jax.random.PRNGKey(0)
    k_x1, k_w1, k_x2, k_w2, k_x3, k_w3 = jax.random.split(key, 6)

    # Test 1: small module-like shapes (batch=8, in=32, out=64), GeLU, f32.
    batch, in_features, out_features = 8, 32, 64
    x1 = jax.random.normal(k_x1, (batch, in_features), dtype=jnp.float32)
    v1, g1, b1 = init_params(k_w1, in_features, out_features, activations=True)
    y1 = linear_weightnorm(x1, v1, g1, b1, activations=True)
    jax.block_until_ready(y1)
    y1_ref = _reference(x1, v1, g1, b1, activations=True)
    assert y1.shape == (batch, out_features)
    assert jnp.allclose(y1, y1_ref, atol=1e-5, rtol=1e-5)

    # Test 2: multi-K-step grid (exercises accumulation into the resident f32 output
    # block plus K/N padding), no activation.
    M2, K2, N2 = 128, 2304, 384
    x2 = jax.random.normal(k_x2, (M2, K2), dtype=jnp.float32)
    v2, g2, b2 = init_params(k_w2, K2, N2, activations=False)
    y2 = linear_weightnorm(x2, v2, g2, b2, activations=False)
    jax.block_until_ready(y2)
    y2_ref = _reference(x2, v2, g2, b2, activations=False)
    assert y2.shape == (M2, N2)
    assert jnp.allclose(y2, y2_ref, atol=1e-4, rtol=1e-4)

    # Test 3: bf16 I/O (exercises the scratch-accumulator kernel and 16-row sublane
    # packing of tm), GeLU; params prepared once and reused across two calls.
    M3, K3, N3 = 64, 512, 256
    x3 = jax.random.normal(k_x3, (M3, K3), dtype=jnp.float32).astype(jnp.bfloat16)
    v3f, g3, b3 = init_params(k_w3, K3, N3, activations=True)
    v3 = v3f.astype(jnp.bfloat16)
    wt3, s3, bb3 = prepare_weightnorm_params(v3, g3, b3, operand_dtype=jnp.bfloat16)
    y3a = linear_weightnorm_prepared(x3, wt3, s3, bb3, activations=True)
    y3b = linear_weightnorm_prepared(x3 * jnp.bfloat16(0.5), wt3, s3, bb3, activations=True)
    jax.block_until_ready((y3a, y3b))
    y3_ref = _reference(x3, v3, g3, b3, activations=True)
    assert y3a.shape == (M3, N3) and y3a.dtype == jnp.bfloat16
    assert jnp.allclose(y3a.astype(jnp.float32), y3_ref, atol=5e-2, rtol=5e-2)

    print("KERNEL_OK")
</pallas_src>

<mosaic_0001>
module attributes {stable_mosaic.version = 11 : i64} {
  func.func @_linear_wn_kernel_f32out(%arg0: i32, %arg1: i32, %arg2: i32, %arg3: memref<8x256xf32, #tpu.memory_space<vmem>>, %arg4: memref<256x256xf32, #tpu.memory_space<vmem>>, %arg5: memref<1x256xf32, #tpu.memory_space<vmem>>, %arg6: memref<1x256xf32, #tpu.memory_space<vmem>>, %arg7: memref<8x256xf32, #tpu.memory_space<vmem>>) attributes {dimension_semantics = [#tpu.dimension_semantics<parallel>, #tpu.dimension_semantics<parallel>, #tpu.dimension_semantics<arbitrary>], iteration_bounds = array<i64: 1, 1, 1>, scalar_prefetch = 0 : i64, scratch_operands = 0 : i64, tpu.core_type = #tpu.core_type<tc>, window_params = [{transform_indices = @transform_0, window_bounds = array<i64: 8, 256>}, {transform_indices = @transform_1, window_bounds = array<i64: 256, 256>}, {transform_indices = @transform_2, window_bounds = array<i64: 1, 256>}, {transform_indices = @transform_3, window_bounds = array<i64: 1, 256>}, {transform_indices = @transform_4, window_bounds = array<i64: 8, 256>}]} {
    %c0_i32 = arith.constant 0 : i32
    %0 = arith.cmpi eq, %arg2, %c0_i32 : i32
    %1 = arith.extui %0 : i1 to i32
    %c0_i32_0 = arith.constant 0 : i32
    %2 = arith.cmpi ne, %1, %c0_i32_0 : i32
    scf.if %2 {
      %cst_10 = arith.constant 0.000000e+00 : f32
      %12 = vector.broadcast %cst_10 : f32 to vector<8x256xf32>
      %c0_11 = arith.constant 0 : index
      %c0_12 = arith.constant 0 : index
      %13 = vector.load %arg7[%c0_11, %c0_12] : memref<8x256xf32, #tpu.memory_space<vmem>>, vector<8x256xf32>
      tpu.vector_store %arg7[%c0_11, %c0_12], %12 {strides = array<i32>} : memref<8x256xf32, #tpu.memory_space<vmem>>, vector<8x256xf32>,
    } else {
    }
    %c0 = arith.constant 0 : index
    %c0_1 = arith.constant 0 : index
    %3 = vector.load %arg7[%c0, %c0_1] : memref<8x256xf32, #tpu.memory_space<vmem>>, vector<8x256xf32>
    %c0_2 = arith.constant 0 : index
    %c0_3 = arith.constant 0 : index
    %4 = vector.load %arg3[%c0_2, %c0_3] : memref<8x256xf32, #tpu.memory_space<vmem>>, vector<8x256xf32>
    %c0_4 = arith.constant 0 : index
    %c0_5 = arith.constant 0 : index
    %5 = vector.load %arg4[%c0_4, %c0_5] : memref<256x256xf32, #tpu.memory_space<vmem>>, vector<256x256xf32>
    %cst = arith.constant dense<0.000000e+00> : vector<8x256xf32>
    %6 = tpu.matmul %4, %5, %cst {dimension_numbers = #tpu.dot_dimension_numbers<[1], [0], [0], [1], [0, 0, 1, 1], [], []>} : vector<8x256xf32>, vector<256x256xf32>, vector<8x256xf32> -> vector<8x256xf32>
    %7 = arith.addf %3, %6 : vector<8x256xf32>
    %c0_6 = arith.constant 0 : index
    %c0_7 = arith.constant 0 : index
    %8 = vector.load %arg7[%c0_6, %c0_7] : memref<8x256xf32, #tpu.memory_space<vmem>>, vector<8x256xf32>
    tpu.vector_store %arg7[%c0_6, %c0_7], %7 {strides = array<i32>} : memref<8x256xf32, #tpu.memory_space<vmem>>, vector<8x256xf32>,
    %c0_i32_8 = arith.constant 0 : i32
    %9 = arith.cmpi eq, %arg2, %c0_i32_8 : i32
    %10 = arith.extui %9 : i1 to i32
    %c0_i32_9 = arith.constant 0 : i32
    %11 = arith.cmpi ne, %10, %c0_i32_9 : i32
    scf.if %11 {
      %c0_10 = arith.constant 0 : index
      %c0_11 = arith.constant 0 : index
      %12 = vector.load %arg7[%c0_10, %c0_11] : memref<8x256xf32, #tpu.memory_space<vmem>>, vector<8x256xf32>
      %c0_12 = arith.constant 0 : index
      %c0_13 = arith.constant 0 : index
      %13 = vector.load %arg5[%c0_12, %c0_13] : memref<1x256xf32, #tpu.memory_space<vmem>>, vector<1x256xf32>
      %14 = vector.broadcast %13 : vector<1x256xf32> to vector<8x256xf32>
      %15 = arith.mulf %12, %14 : vector<8x256xf32>
      %c0_14 = arith.constant 0 : index
      %c0_15 = arith.constant 0 : index
      %16 = vector.load %arg6[%c0_14, %c0_15] : memref<1x256xf32, #tpu.memory_space<vmem>>, vector<1x256xf32>
      %17 = vector.broadcast %16 : vector<1x256xf32> to vector<8x256xf32>
      %18 = arith.addf %15, %17 : vector<8x256xf32>
      %cst_16 = arith.constant 5.000000e-01 : f32
      %19 = vector.broadcast %cst_16 : f32 to vector<8x256xf32>
      %20 = arith.mulf %19, %18 : vector<8x256xf32>
      %cst_17 = arith.constant 0.797884583 : f32
      %21 = vector.broadcast %cst_17 : f32 to vector<8x256xf32>
      %22 = arith.mulf %18, %21 : vector<8x256xf32>
      %cst_18 = arith.constant 4.471500e-02 : f32
      %23 = vector.broadcast %cst_18 : f32 to vector<8x256xf32>
      %24 = arith.mulf %23, %18 : vector<8x256xf32>
      %25 = arith.mulf %24, %18 : vector<8x256xf32>
      %cst_19 = arith.constant 1.000000e+00 : f32
      %26 = vector.broadcast %cst_19 : f32 to vector<8x256xf32>
      %27 = arith.addf %26, %25 : vector<8x256xf32>
      %28 = arith.mulf %22, %27 : vector<8x256xf32>
      %29 = math.tanh %28 : vector<8x256xf32>
      %cst_20 = arith.constant 1.000000e+00 : f32
      %30 = vector.broadcast %cst_20 : f32 to vector<8x256xf32>
      %31 = arith.addf %30, %29 : vector<8x256xf32>
      %32 = arith.mulf %20, %31 : vector<8x256xf32>
      %c0_21 = arith.constant 0 : index
      %c0_22 = arith.constant 0 : index
      %33 = vector.load %arg7[%c0_21, %c0_22] : memref<8x256xf32, #tpu.memory_space<vmem>>, vector<8x256xf32>
      tpu.vector_store %arg7[%c0_21, %c0_22], %32 {strides = array<i32>} : memref<8x256xf32, #tpu.memory_space<vmem>>, vector<8x256xf32>,
    } else {
    }
    return
  }
  func.func @transform_0(%arg0: i32, %arg1: i32, %arg2: i32) -> (i32, i32) {
    %c0_i32 = arith.constant 0 : i32
    return %arg0, %arg2 : i32, i32
  }
  func.func @transform_1(%arg0: i32, %arg1: i32, %arg2: i32) -> (i32, i32) {
    %c0_i32 = arith.constant 0 : i32
    return %arg2, %arg1 : i32, i32
  }
  func.func @transform_2(%arg0: i32, %arg1: i32, %arg2: i32) -> (i32, i32) {
    %c0_i32 = arith.constant 0 : i32
    %c0_i32_0 = arith.constant 0 : i32
    return %c0_i32, %arg1 : i32, i32
  }
  func.func @transform_3(%arg0: i32, %arg1: i32, %arg2: i32) -> (i32, i32) {
    %c0_i32 = arith.constant 0 : i32
    %c0_i32_0 = arith.constant 0 : i32
    return %c0_i32, %arg1 : i32, i32
  }
  func.func @transform_4(%arg0: i32, %arg1: i32, %arg2: i32) -> (i32, i32) {
    %c0_i32 = arith.constant 0 : i32
    return %arg0, %arg1 : i32, i32
  }
}

</mosaic_0001>

<bundles_post_ra>
// kernel: tpu_custom_call.1
= control target key start
LH: loop header
LB: loop body
LE: loop exit
PB: predicated region body
PF: predicated region fallthrough
CT: control target
= control target key end

     0   :  { %9 = vsyncpa [#allocation3], 0  ;;  %s487_s0 = inlined_call_operand.hbm [shape: f32[8,256], index: 0, kind: input, shape index: {}]   ;;  %s488_s1 = inlined_call_operand.hbm [shape: f32[256,256], index: 1, kind: input, shape index: {}]   ;;  %s489_s2 = inlined_call_operand.vmem [shape: f32[1,256], index: 2, kind: input, shape index: {}]   ;;  %s490_s3 = inlined_call_operand.vmem [shape: f32[1,256], index: 3, kind: input, shape index: {}]   ;;  %s491_s4 = inlined_call_operand.hbm [shape: f32[8,256], index: 4, kind: output, shape index: {}]  }
   0x1   :  { %10 = vsyncpa [#allocation6], 0 }
   0x2   :  { %11 = vsyncpa [#allocation4], 0  ;;  %s408_s15 = smov [#allocation2]   ;;  %s409_s17 = smov [#allocation5]  }
   0x3   :  { %s18_s16 = sshll.u32 %s408_s15, 4  ;;  %s27_s18 = sshll.u32 %s409_s17, 4  ;;  %s19_s16 = int_to_ptr.vmem [resolvable:$true] %s18_s16  ;;  %s438_s18 = int_to_ptr.vmem [resolvable:$true] %s27_s18 }
   0x4   :  { %s336_s21 = scalar_lea.hbm %s487_s0, 256 }
   0x5   :  { %p337_p0 = scmp.ne.s32.totalorder %s487_s0, %s336_s21  ;;  %p340_p1 = scmp.lt.u32.totalorder %s336_s21, %s487_s0 }
   0x7   :  { %p342_p2 = pnand %p340_p1, %p337_p0 }
   0x9   :  { %345 = shalt.err (!%p342_p2)
}
   0xa   :  { %s346_s26 = scalar_lea.vmem %s19_s16, 256  ;;  %p351_p4 = scmp.lt.s32.totalorder %s19_s16, %s19_s16 }
   0xb   :  { %p347_p3 = scmp.ne.s32.totalorder %s19_s16, %s346_s26  ;;  %p352_p5 = scmp.lt.s32.totalorder %s346_s26, %s346_s26 }
   0xd   :  { %p353_p6 = por %p352_p5, %p351_p4 }
   0xf   :  { %p354_p7 = pnand %p353_p6, %p347_p3 }
  0x11   :  { %357 = shalt.err (!%p354_p7)
}
  0x12   :  { %21 = dma.hbm_to_vmem [thread:$0]  %s487_s0, 256, %s19_s16, [#allocation3]  }
  0x13   :  { %s358_s5 = scalar_lea.hbm %s488_s1, 8192 }
  0x14   :  { %p359_p8 = scmp.ne.s32.totalorder %s488_s1, %s358_s5  ;;  %p362_p9 = scmp.lt.u32.totalorder %s358_s5, %s488_s1 }
  0x16   :  { %p364_p10 = pnand %p362_p9, %p359_p8 }
  0x18   :  { %367 = shalt.err (!%p364_p10)
}
  0x19   :  { %s368_s10 = scalar_lea.vmem %s438_s18, 8192  ;;  %p373_p12 = scmp.lt.s32.totalorder %s438_s18, %s438_s18 }
  0x1a   :  { %p369_p11 = scmp.ne.s32.totalorder %s438_s18, %s368_s10  ;;  %p374_p13 = scmp.lt.s32.totalorder %s368_s10, %s368_s10 }
  0x1c   :  { %p375_p0 = por %p374_p13, %p373_p12 }
  0x1e   :  { %p376_p1 = pnand %p375_p0, %p369_p11 }
  0x20   :  { %379 = shalt.err (!%p376_p1)
}
  0x21   :  { %s410_s0 = smov 256   ;;  %s411_s11 = smov 16  }
  0x22   :  { %33 = dma.hbm_to_vmem [thread:$0]  %s488_s1, 8192, %s438_s18, [#allocation6], %s410_s0, %s410_s0, %s411_s11  }
  0x23   :  { %402 = dma.done.wait [#allocation3], 256  }
  0x24   :  { %403 = vsyncadd [#allocation3], 4294967040 }
  0x25   :  { %404 = dma.done.wait [#allocation6], 8192  }
  0x26   :  { %405 = vsyncadd [#allocation6], 4294959104  ;;  %v55_v0 = vld [vmem:[#allocation5 + $0x8] sm:$0xff]  ;;  %v57_v1 = vld [vmem:[#allocation5 + $0x18] sm:$0xff] }
  0x27   :  { %v54_v2 = vld [vmem:[#allocation5] sm:$0xff]  ;;  %v262_v3 = vpack.c.bf16 %v57_v1, %v55_v0  ;;  %v56_v4 = vld [vmem:[#allocation5 + $0x10] sm:$0xff]  ;;  %v59_v5 = vld [vmem:[#allocation5 + $0x28] sm:$0xff] }
  0x28   :  { %v61_v6 = vld [vmem:[#allocation5 + $0x38] sm:$0xff]  ;;  %v264_v7 = vpack.c.bf16 %v56_v4, %v54_v2  ;;  %v58_v9 = vld [vmem:[#allocation5 + $0x20] sm:$0xff]  ;;  %v60_v10 = vld [vmem:[#allocation5 + $0x30] sm:$0xff] }
  0x29   :  { %v266_v8 = vpack.c.bf16 %v61_v6, %v59_v5  ;;  %v63_v11 = vld [vmem:[#allocation5 + $0x48] sm:$0xff]  ;;  %263 = vmatprep.subr.bf16.mxu0 %v262_v3  ;;  %v65_v12 = vld [vmem:[#allocation5 + $0x58] sm:$0xff]  ;;  %v268_v13 = vpack.c.bf16 %v60_v10, %v58_v9  ;;  %v62_v15 = vld [vmem:[#allocation5 + $0x40] sm:$0xff] }
  0x2a   :  { %265 = vmatpush1.bf16.msra.mxu0 %v264_v7  ;;  %v270_v14 = vpack.c.bf16 %v65_v12, %v63_v11  ;;  %v64_v16 = vld [vmem:[#allocation5 + $0x50] sm:$0xff]  ;;  %v67_v17 = vld [vmem:[#allocation5 + $0x68] sm:$0xff]  ;;  %v69_v18 = vld [vmem:[#allocation5 + $0x78] sm:$0xff] }
  0x2b   :  { %267 = vmatprep.subr.bf16.mxu0 %v266_v8  ;;  %v272_v19 = vpack.c.bf16 %v64_v16, %v62_v15  ;;  %v274_v20 = vpack.c.bf16 %v69_v18, %v67_v17  ;;  %v66_v21 = vld [vmem:[#allocation5 + $0x60] sm:$0xff]  ;;  %v68_v22 = vld [vmem:[#allocation5 + $0x70] sm:$0xff]  ;;  %v71_v23 = vld [vmem:[#allocation5 + $0x88] sm:$0xff] }
  0x2c   :  { %v73_v24 = vld [vmem:[#allocation5 + $0x98] sm:$0xff]  ;;  %v276_v25 = vpack.c.bf16 %v68_v22, %v66_v21  ;;  %v70_v27 = vld [vmem:[#allocation5 + $0x80] sm:$0xff]  ;;  %v72_v28 = vld [vmem:[#allocation5 + $0x90] sm:$0xff] }
  0x2d   :  { %v278_v26 = vpack.c.bf16 %v73_v24, %v71_v23  ;;  %v75_v29 = vld [vmem:[#allocation5 + $0xa8] sm:$0xff]  ;;  %v77_v30 = vld [vmem:[#allocation5 + $0xb8] sm:$0xff]  ;;  %v280_v31 = vpack.c.bf16 %v72_v28, %v70_v27  ;;  %v74_v33 = vld [vmem:[#allocation5 + $0xa0] sm:$0xff] }
  0x2e   :  { %269 = vmatpush1.bf16.msra.mxu0 %v268_v13  ;;  %v282_v32 = vpack.c.bf16 %v77_v30, %v75_v29  ;;  %v76_v34 = vld [vmem:[#allocation5 + $0xb0] sm:$0xff]  ;;  %v79_v35 = vld [vmem:[#allocation5 + $0xc8] sm:$0xff]  ;;  %v81_v36 = vld [vmem:[#allocation5 + $0xd8] sm:$0xff] }
  0x2f   :  { %271 = vmatprep.subr.bf16.mxu0 %v270_v14  ;;  %v284_v37 = vpack.c.bf16 %v76_v34, %v74_v33  ;;  %v286_v38 = vpack.c.bf16 %v81_v36, %v79_v35  ;;  %v78_v39 = vld [vmem:[#allocation5 + $0xc0] sm:$0xff]  ;;  %v80_v40 = vld [vmem:[#allocation5 + $0xd0] sm:$0xff]  ;;  %v53_v41 = vld [vmem:[#allocation2 + $0x8] sm:$0xff]  ;;  %v200_v34 = vlaneseq }
  0x30   :  { %v83_v42 = vld [vmem:[#allocation5 + $0xe8] sm:$0xff]  ;;  %v85_v43 = vld [vmem:[#allocation5 + $0xf8] sm:$0xff]  ;;  %182 = vmatprep.mubr.f32.mxu0 %v53_v41  ;;  %v288_v44 = vpack.c.bf16 %v80_v40, %v78_v39  ;;  %v82_v46 = vld [vmem:[#allocation5 + $0xe0] sm:$0xff] }
  0x31   :  { %v290_v45 = vpack.c.bf16 %v85_v43, %v83_v42  ;;  %v84_v47 = vld [vmem:[#allocation5 + $0xf0] sm:$0xff]  ;;  %v87_v48 = vld [vmem:[#allocation5 + $0x108] sm:$0xff]  ;;  %v89_v49 = vld [vmem:[#allocation5 + $0x118] sm:$0xff]  ;;  %v201_v35 = vshrl.u32 %v200_v34, 7 }
  0x32   :  { %273 = vmatpush1.bf16.msra.mxu0 %v272_v19  ;;  %v292_v50 = vpack.c.bf16 %v84_v47, %v82_v46  ;;  %v294_v51 = vpack.c.bf16 %v89_v49, %v87_v48  ;;  %v86_v52 = vld [vmem:[#allocation5 + $0x100] sm:$0xff]  ;;  %v88_v53 = vld [vmem:[#allocation5 + $0x110] sm:$0xff]  ;;  %v91_v54 = vld [vmem:[#allocation5 + $0x128] sm:$0xff] }
  0x33   :  { %275 = vmatprep.subr.bf16.mxu0 %v274_v20  ;;  %v93_v55 = vld [vmem:[#allocation5 + $0x138] sm:$0xff]  ;;  %v296_v56 = vpack.c.bf16 %v88_v53, %v86_v52  ;;  %v90_v58 = vld [vmem:[#allocation5 + $0x120] sm:$0xff]  ;;  %v92_v59 = vld [vmem:[#allocation5 + $0x130] sm:$0xff]  ;;  %v202_v36 = vsub.s32 0, %v201_v35 }
  0x34   :  { %v298_v57 = vpack.c.bf16 %v93_v55, %v91_v54  ;;  %v95_v60 = vld [vmem:[#allocation5 + $0x148] sm:$0xff]  ;;  %v97_v61 = vld [vmem:[#allocation5 + $0x158] sm:$0xff]  ;;  %v300_v62 = vpack.c.bf16 %v92_v59, %v90_v58  ;;  %v94_v0 = vld [vmem:[#allocation5 + $0x140] sm:$0xff] }
  0x35   :  { %v302_v63 = vpack.c.bf16 %v97_v61, %v95_v60  ;;  %v96_v1 = vld [vmem:[#allocation5 + $0x150] sm:$0xff]  ;;  %v99_v2 = vld [vmem:[#allocation5 + $0x168] sm:$0xff]  ;;  %v101_v3 = vld [vmem:[#allocation5 + $0x178] sm:$0xff] }
  0x36   :  { %277 = vmatpush1.bf16.msra.mxu0 %v276_v25  ;;  %v304_v4 = vpack.c.bf16 %v96_v1, %v94_v0  ;;  %v306_v5 = vpack.c.bf16 %v101_v3, %v99_v2  ;;  %v98_v6 = vld [vmem:[#allocation5 + $0x160] sm:$0xff]  ;;  %v100_v7 = vld [vmem:[#allocation5 + $0x170] sm:$0xff]  ;;  %v103_v8 = vld [vmem:[#allocation5 + $0x188] sm:$0xff] }
  0x37   :  { %279 = vmatprep.subr.bf16.mxu0 %v278_v26  ;;  %v105_v9 = vld [vmem:[#allocation5 + $0x198] sm:$0xff]  ;;  %v308_v10 = vpack.c.bf16 %v100_v7, %v98_v6  ;;  %v102_v12 = vld [vmem:[#allocation5 + $0x180] sm:$0xff]  ;;  %v104_v13 = vld [vmem:[#allocation5 + $0x190] sm:$0xff] }
  0x38   :  { %v310_v11 = vpack.c.bf16 %v105_v9, %v103_v8  ;;  %v107_v14 = vld [vmem:[#allocation5 + $0x1a8] sm:$0xff]  ;;  %v109_v15 = vld [vmem:[#allocation5 + $0x1b8] sm:$0xff]  ;;  %v312_v16 = vpack.c.bf16 %v104_v13, %v102_v12  ;;  %v106_v18 = vld [vmem:[#allocation5 + $0x1a0] sm:$0xff] }
  0x39   :  { %v314_v17 = vpack.c.bf16 %v109_v15, %v107_v14  ;;  %v108_v19 = vld [vmem:[#allocation5 + $0x1b0] sm:$0xff]  ;;  %v111_v20 = vld [vmem:[#allocation5 + $0x1c8] sm:$0xff]  ;;  %v113_v21 = vld [vmem:[#allocation5 + $0x1d8] sm:$0xff] }
  0x3a   :  { %281 = vmatpush1.bf16.msra.mxu0 %v280_v31  ;;  %v316_v22 = vpack.c.bf16 %v108_v19, %v106_v18  ;;  %v318_v23 = vpack.c.bf16 %v113_v21, %v111_v20  ;;  %v110_v24 = vld [vmem:[#allocation5 + $0x1c0] sm:$0xff]  ;;  %v112_v25 = vld [vmem:[#allocation5 + $0x1d0] sm:$0xff]  ;;  %v115_v26 = vld [vmem:[#allocation5 + $0x1e8] sm:$0xff] }
  0x3b   :  { %283 = vmatprep.subr.bf16.mxu0 %v282_v32  ;;  %v117_v27 = vld [vmem:[#allocation5 + $0x1f8] sm:$0xff]  ;;  %v320_v28 = vpack.c.bf16 %v112_v25, %v110_v24  ;;  %v114_v30 = vld [vmem:[#allocation5 + $0x1e0] sm:$0xff]  ;;  %v116_v31 = vld [vmem:[#allocation5 + $0x1f0] sm:$0xff] }
  0x3c   :  { %v322_v29 = vpack.c.bf16 %v117_v27, %v115_v26  ;;  %v324_v32 = vpack.c.bf16 %v116_v31, %v114_v30  ;;  %v52_v33 = vld [vmem:[#allocation2] sm:$0xff] }
  0x3d   :  { %v212_v39 = vld [vmem:[%s490_s3] sm:$0x3] }
  0x3e   :  { %285 = vmatpush1.bf16.msra.mxu0 %v284_v37  ;;  %v198_v37 = vld [vmem:[%s489_s2] sm:$0x3]  ;;  %s412_s2 = smov [#allocation7]  }
  0x3f   :  { %287 = vmatprep.subr.bf16.mxu0 %v286_v38  ;;  %v206_v38 = vsub.s32 1, %v201_v35  ;;  %v203_v40 = vrot.slane %v198_v37, %v202_v36  ;;  %s252_s3 = sshll.u32 %s412_s2, 4  ;;  %s253_s3 = int_to_ptr.vmem [resolvable:$true] %s252_s3 }
  0x40   :  { %s380_s17 = scalar_lea.vmem %s253_s3, 256  ;;  %p385_p3 = scmp.lt.s32.totalorder %s253_s3, %s253_s3 }
  0x41   :  { %v207_v42 = vrot.slane %v198_v37, %v206_v38  ;;  %p381_p2 = scmp.ne.s32.totalorder %s253_s3, %s380_s17  ;;  %p386_p4 = scmp.lt.s32.totalorder %s380_s17, %s380_s17 }
  0x42   :  { %289 = vmatpush1.bf16.msra.mxu0 %v288_v44  ;;  %v217_v44 = vrot.slane %v212_v39, %v202_v36 }
  0x43   :  { %291 = vmatprep.subr.bf16.mxu0 %v290_v45  ;;  %v221_v45 = vrot.slane %v212_v39, %v206_v38  ;;  %p387_p5 = por %p386_p4, %p385_p3 }
  0x45   :  { %p388_p6 = pnand %p387_p5, %p381_p2 }
  0x46   :  { %293 = vmatpush1.bf16.msra.mxu0 %v292_v50 }
  0x47   :  { %295 = vmatprep.subr.bf16.mxu0 %v294_v51 }
  0x4a   :  { %297 = vmatpush1.bf16.msra.mxu0 %v296_v56 }
  0x4b   :  { %299 = vmatprep.subr.bf16.mxu0 %v298_v57 }
  0x4e   :  { %301 = vmatpush1.bf16.msra.mxu0 %v300_v62 }
  0x4f   :  { %303 = vmatprep.subr.bf16.mxu0 %v302_v63 }
  0x52   :  { %305 = vmatpush1.bf16.msra.mxu0 %v304_v4 }
  0x53   :  { %307 = vmatprep.subr.bf16.mxu0 %v306_v5 }
  0x56   :  { %309 = vmatpush1.bf16.msra.mxu0 %v308_v10 }
  0x57   :  { %311 = vmatprep.subr.bf16.mxu0 %v310_v11 }
  0x5a   :  { %313 = vmatpush1.bf16.msra.mxu0 %v312_v16 }
  0x5b   :  { %315 = vmatprep.subr.bf16.mxu0 %v314_v17 }
  0x5e   :  { %317 = vmatpush1.bf16.msra.mxu0 %v316_v22 }
  0x5f   :  { %319 = vmatprep.subr.bf16.mxu0 %v318_v23 }
  0x62   :  { %321 = vmatpush1.bf16.msra.mxu0 %v320_v28 }
  0x63   :  { %323 = vmatprep.subr.bf16.mxu0 %v322_v29 }
  0x66   :  { %325 = vmatpush1.bf16.msra.mxu0 %v324_v32 }
  0x69   :  { %183 = vmatmul.mubr.f32.vlgmr.msra.gmra.mrb[0].mxu0 %v52_v33 }
 0x13c   :  { %v184_v41 = vpop.f32.mrb[0].mxu0 }
 0x13d   :  { %v186_v43 = vpop.f32.mrb[1].mxu0  ;;  %v210_v46 = vmul.f32 %v203_v40, %v184_v41 }
 0x13e   :  { %v211_v47 = vmul.f32 %v207_v42, %v186_v43 }
 0x13f   :  { %v224_v48 = vadd.f32 %v217_v44, %v210_v46 }
 0x140   :  { %v225_v49 = vadd.f32 %v221_v45, %v211_v47 }
 0x141   :  { %v230_v50 = vmul.f32 0.044715, %v224_v48  ;;  %v228_v54 = vmul.f32 0.7978846, %v224_v48  ;;  %v226_v62 = vmul.f32 0.5, %v224_v48 }
 0x142   :  { %v231_v51 = vmul.f32 0.044715, %v225_v49  ;;  %v229_v56 = vmul.f32 0.7978846, %v225_v49  ;;  %v227_v0 = vmul.f32 0.5, %v225_v49 }
 0x143   :  { %v232_v52 = vmul.f32 %v230_v50, %v224_v48 }
 0x144   :  { %v233_v53 = vmul.f32 %v231_v51, %v225_v49 }
 0x145   :  { %v234_v55 = vadd.f32 1.0, %v232_v52 }
 0x146   :  { %v235_v57 = vadd.f32 1.0, %v233_v53 }
 0x147   :  { %v236_v58 = vmul.f32 %v234_v55, %v228_v54 }
 0x148   :  { %v237_v59 = vmul.f32 %v235_v57, %v229_v56 }
 0x149   :  { %332 = vtanh.f32 %v236_v58 }
 0x14a   :  { %334 = vtanh.f32 %v237_v59 }
 0x153   :  { %v333_v60 = vpop.eup %332 }
 0x154   :  { %v335_v61 = vpop.eup %334  ;;  %v240_v63 = vadd.f32 1.0, %v333_v60 }
 0x155   :  { %v241_v1 = vadd.f32 1.0, %v335_v61 }
 0x156   :  { %v242_v2 = vmul.f32 %v240_v63, %v226_v62 }
 0x157   :  { %v243_v3 = vmul.f32 %v241_v1, %v227_v0 }
 0x158   :  { %244 = vst [vmem:[#allocation7] sm:$0xff] %v242_v2 }
 0x159   :  { %245 = vst [vmem:[#allocation7 + $0x8] sm:$0xff] %v243_v3 }
 0x15a   :  { %391 = shalt.err (!%p388_p6)
}
 0x15b   :  { %s392_s20 = scalar_lea.hbm %s491_s4, 256 }
 0x15c   :  { %p393_p7 = scmp.ne.s32.totalorder %s491_s4, %s392_s20  ;;  %p396_p8 = scmp.lt.u32.totalorder %s392_s20, %s491_s4 }
 0x15e   :  { %p398_p9 = pnand %p396_p8, %p393_p7 }
 0x160   :  { %401 = shalt.err (!%p398_p9)
}
 0x161   :  { %255 = dma.vmem_to_hbm [thread:$0]  %s253_s3, 256, %s491_s4, [#allocation4]  }
 0x162   :  { %406 = dma.done.wait [#allocation4], 256  }
 0x163   :  { %407 = vsyncadd [#allocation4], 4294967040 }
 0x164   :  { %259 = vsyncpa [#allocation3], 1 }
 0x165   :  { %260 = vsyncpa [#allocation6], 1 }
 0x166   :  { %261 = vsyncpa [#allocation4], 1 }

</bundles_post_ra>
